<compile_context>
chip_gen: v7x
topology: tpu7x:2x2x1
jax: 0.10.0
libtpu: 0.0.40
codegen_flags: <defaults>
</compile_context>

<pallas_src>
import functools
import math

import jax
import jax.numpy as jnp
from jax import lax
from jax.experimental import pallas as pl
from jax.experimental.pallas import tpu as pltpu


# ----------------------------- Pallas kernel -----------------------------

def _sdpa_kernel(*refs, scale, masked):
    """One (batch, head, q-tile) grid step.

    refs = (q_ref, k_ref, v_ref[, mask_ref], out_ref, score_ref)
      q_ref:           (1, 1, TQ, d)   input dtype
      k_ref / v_ref:   (1, 1, Lk, d)   resident across the q-tile axis
      mask_ref:        (1, 1, TQ, Lk)  int8, 0 == masked out
      out_ref:         (1, 1, TQ, d)
      score_ref:       (1, 1, TQ, Lk)
    """
    if masked:
        q_ref, k_ref, v_ref, m_ref, out_ref, score_ref = refs
    else:
        q_ref, k_ref, v_ref, out_ref, score_ref = refs
        m_ref = None

    q = q_ref[0, 0]                                  # (TQ, d)
    k = k_ref[0, 0]                                  # (Lk, d)
    v = v_ref[0, 0]                                  # (Lk, d)

    # q @ k^T in NT form (contract the last dims) -> no in-kernel transpose,
    # operands in their native dtype, f32 accumulation on the MXU.
    s = lax.dot_general(q, k,
                        dimension_numbers=(((1,), (1,)), ((), ())),
                        preferred_element_type=jnp.float32)      # (TQ, Lk) f32
    s = s * jnp.float32(scale)                        # matches q @ k_t / sqrt(d)

    if masked:
        keep = m_ref[0, 0].astype(jnp.int32)          # 0 == mask out
        s = jnp.where(keep == 0, jnp.float32(-10000.0), s)

    # Numerically stable softmax over the key axis; exact divide (no approx
    # reciprocal) so score/output match the reference softmax.
    s_max = jnp.max(s, axis=-1, keepdims=True)
    p = jnp.exp(s - s_max)
    p = p / jnp.sum(p, axis=-1, keepdims=True)

    score_ref[0, 0] = p.astype(score_ref.dtype)
    out = lax.dot_general(p.astype(v.dtype), v,       # bf16 PV matmul when v is bf16
                          dimension_numbers=(((1,), (0,)), ((), ())),
                          preferred_element_type=jnp.float32)
    out_ref[0, 0] = out.astype(out_ref.dtype)


# ----------------------------- tiling helpers -----------------------------

_Q_TILE_CANDIDATES = (512, 256, 128, 64, 32, 16, 8)
_VMEM_BUDGET = 40 * 1024 * 1024        # conservative: fits v7x 64 MiB physical VMEM


def _vmem_bytes(tq, lk, d, itemsize, masked):
    """Rough double-buffered working set for one grid step."""
    per_step = (2 * tq * d * itemsize                 # q tile + out tile
                + tq * lk * itemsize                  # score tile
                + (tq * lk if masked else 0)          # int8 mask tile
                + 2 * lk * d * itemsize)              # resident K + V
    return 2 * per_step                               # double buffering


def _choose_q_tile(lq, lk, d, itemsize, masked, max_q_tile):
    if lq <= max_q_tile and _vmem_bytes(lq, lk, d, itemsize, masked) <= _VMEM_BUDGET:
        return lq
    divisors = [c for c in _Q_TILE_CANDIDATES
                if c <= max_q_tile and c < lq and lq % c == 0]
    for c in divisors:
        if _vmem_bytes(c, lk, d, itemsize, masked) <= _VMEM_BUDGET:
            return c
    if divisors:
        return divisors[-1]
    return lq   # irregular Lq (not a multiple of 8): single full-length tile


# ----------------------------- wrapper -----------------------------

def scale_dot_product_attention(q, k, v, mask=None, e=1e-12, *, max_q_tile=512):
    """Pallas equivalent of ScaleDotProductAttention.forward.

    q, k, v: (batch, head, length, d_tensor), any float dtype (bf16 runs the
    matmuls in bf16 with f32 accumulation).  mask: anything broadcastable to
    (batch, head, len_q, len_k); positions where mask == 0 get -10000 before
    softmax.  Returns (output, score) in the input dtype.  `e` is unused, as in
    the reference.
    """
    q = jnp.asarray(q)
    k = jnp.asarray(k)
    v = jnp.asarray(v)

    B, H, Lq, d = q.shape
    Lk = k.shape[2]
    scale = 1.0 / math.sqrt(d)
    out_dtype = q.dtype
    itemsize = jnp.dtype(out_dtype).itemsize
    masked = mask is not None

    # TODO(synk): for extremely long Lk the resident K/V tiles would need a
    # key-tiled online-softmax (flash) variant; the module returns the full
    # (Lq, Lk) score matrix anyway, so resident K/V per (batch, head) is kept.
    TQ = _choose_q_tile(Lq, Lk, d, itemsize, masked, max_q_tile)
    n_q_tiles = Lq // TQ
    grid = (B, H, n_q_tiles)

    q_spec = pl.BlockSpec((1, 1, TQ, d), lambda b, h, iq: (b, h, iq, 0))
    kv_spec = pl.BlockSpec((1, 1, Lk, d), lambda b, h, iq: (b, h, 0, 0))  # resident over iq
    in_specs = [q_spec, kv_spec, kv_spec]
    args = [q, k, v]

    if masked:
        keep = jnp.asarray(mask) != 0
        bshape = jnp.broadcast_shapes(keep.shape, (B, 1, Lq, Lk))
        head_invariant = (bshape[1] == 1)
        target = (B, 1 if head_invariant else H, Lq, Lk)
        keep_i8 = jnp.broadcast_to(keep, target).astype(jnp.int8)   # compact mask
        if head_invariant:
            m_map = lambda b, h, iq: (b, 0, iq, 0)
        else:
            m_map = lambda b, h, iq: (b, h, iq, 0)
        in_specs.append(pl.BlockSpec((1, 1, TQ, Lk), m_map))
        args.append(keep_i8)

    out_specs = (pl.BlockSpec((1, 1, TQ, d), lambda b, h, iq: (b, h, iq, 0)),
                 pl.BlockSpec((1, 1, TQ, Lk), lambda b, h, iq: (b, h, iq, 0)))
    out_shape = (jax.ShapeDtypeStruct((B, H, Lq, d), out_dtype),
                 jax.ShapeDtypeStruct((B, H, Lq, Lk), out_dtype))

    vmem_limit = int(min(48 * 1024 * 1024,
                         max(32 * 1024 * 1024,
                             2 * _vmem_bytes(TQ, Lk, d, itemsize, masked))))

    kernel = functools.partial(_sdpa_kernel, scale=scale, masked=masked)

    out, score = pl.pallas_call(
        kernel,
        out_shape=out_shape,
        grid=grid,
        in_specs=in_specs,
        out_specs=out_specs,
        compiler_params=pltpu.CompilerParams(
            dimension_semantics=("parallel", "parallel", "parallel"),
            vmem_limit_bytes=vmem_limit),
    )(*args)
    return out, score


# ----------------------------- pure-JAX reference -----------------------------

def _reference_sdpa(q, k, v, mask=None):
    q = jnp.asarray(q, jnp.float32)
    k = jnp.asarray(k, jnp.float32)
    v = jnp.asarray(v, jnp.float32)
    d = q.shape[-1]
    score = jnp.einsum("bhqd,bhkd->bhqk", q, k,
                       precision=lax.Precision.HIGHEST) / math.sqrt(d)
    if mask is not None:
        score = jnp.where(mask == 0, -10000.0, score)
    score = jax.nn.softmax(score, axis=-1)
    out = jnp.einsum("bhqk,bhkd->bhqd", score, v,
                     precision=lax.Precision.HIGHEST)
    return out, score


# ----------------------------- main -----------------------------

if __name__ == "__main__":
    key = jax.random.PRNGKey(0)
    kq, kk, kv = jax.random.split(key, 3)

    B, H, L, D_T = 2, 4, 8, 8
    q = jax.random.normal(kq, (B, H, L, D_T), dtype=jnp.float32)
    k = jax.random.normal(kk, (B, H, L, D_T), dtype=jnp.float32)
    v = jax.random.normal(kv, (B, H, L, D_T), dtype=jnp.float32)

    # pad + causal mask, shape (B, 1, L, L); 1 = keep, 0 = mask out
    lengths = jnp.array([L, L - 3], dtype=jnp.int32)
    idx = jnp.arange(L)
    key_keep = idx[None, :] < lengths[:, None]                      # (B, L)
    pad_mask = key_keep[:, None, None, :] & key_keep[:, None, :, None]
    causal = jnp.tril(jnp.ones((L, L), dtype=bool))[None, None]
    mask = pad_mask & causal                                        # (B, 1, L, L)

    # --- masked f32 path ---
    out, score = scale_dot_product_attention(q, k, v, mask)
    out, score = jax.block_until_ready((out, score))
    ref_out, ref_score = _reference_sdpa(q, k, v, mask)
    assert out.shape == (B, H, L, D_T) and score.shape == (B, H, L, L)
    assert bool(jnp.all(jnp.isfinite(out))) and bool(jnp.all(jnp.isfinite(score)))
    assert jnp.allclose(out, ref_out, rtol=2e-2, atol=5e-3)
    assert jnp.allclose(score, ref_score, rtol=2e-2, atol=5e-3)

    # --- mask=None f32 path ---
    out2, score2 = scale_dot_product_attention(q, k, v, None)
    out2, score2 = jax.block_until_ready((out2, score2))
    ref_out2, ref_score2 = _reference_sdpa(q, k, v, None)
    assert jnp.allclose(out2, ref_out2, rtol=2e-2, atol=5e-3)
    assert jnp.allclose(score2, ref_score2, rtol=2e-2, atol=5e-3)

    # --- bf16 operands (matmuls run in bf16, softmax in f32) ---
    qb, kb, vb = (x.astype(jnp.bfloat16) for x in (q, k, v))
    out3, score3 = scale_dot_product_attention(qb, kb, vb, mask)
    out3, score3 = jax.block_until_ready((out3, score3))
    ref_out3, ref_score3 = _reference_sdpa(qb, kb, vb, mask)
    assert out3.dtype == jnp.bfloat16 and score3.dtype == jnp.bfloat16
    assert jnp.allclose(out3.astype(jnp.float32), ref_out3, rtol=5e-2, atol=3e-2)
    assert jnp.allclose(score3.astype(jnp.float32), ref_score3, rtol=5e-2, atol=3e-2)

    # --- larger, lane-dense shape exercising the tiled-q / resident-K/V path ---
    B2, H2, L2, D2 = 1, 2, 256, 128
    k2a, k2b, k2c = jax.random.split(jax.random.PRNGKey(1), 3)
    q4 = jax.random.normal(k2a, (B2, H2, L2, D2), dtype=jnp.float32)
    k4 = jax.random.normal(k2b, (B2, H2, L2, D2), dtype=jnp.float32)
    v4 = jax.random.normal(k2c, (B2, H2, L2, D2), dtype=jnp.float32)
    causal2 = jnp.tril(jnp.ones((L2, L2), dtype=bool))[None, None]   # (1,1,L2,L2)
    out4, score4 = scale_dot_product_attention(q4, k4, v4, causal2, max_q_tile=128)
    out4, score4 = jax.block_until_ready((out4, score4))
    ref_out4, ref_score4 = _reference_sdpa(q4, k4, v4, causal2)
    assert bool(jnp.all(jnp.isfinite(out4))) and bool(jnp.all(jnp.isfinite(score4)))
    assert jnp.allclose(out4, ref_out4, rtol=2e-2, atol=1e-2)
    assert jnp.allclose(score4, ref_score4, rtol=2e-2, atol=1e-2)

    print("KERNEL_OK")
</pallas_src>

<mosaic_0001>
module attributes {stable_mosaic.version = 11 : i64} {
  func.func @_sdpa_kernel(%arg0: i32, %arg1: i32, %arg2: i32, %arg3: memref<1x1x8x8xf32, #tpu.memory_space<vmem>>, %arg4: memref<1x1x8x8xf32, #tpu.memory_space<vmem>>, %arg5: memref<1x1x8x8xf32, #tpu.memory_space<vmem>>, %arg6: memref<1x1x8x8xi8, #tpu.memory_space<vmem>>, %arg7: memref<1x1x8x8xf32, #tpu.memory_space<vmem>>, %arg8: memref<1x1x8x8xf32, #tpu.memory_space<vmem>>) attributes {dimension_semantics = [#tpu.dimension_semantics<parallel>, #tpu.dimension_semantics<parallel>, #tpu.dimension_semantics<parallel>], iteration_bounds = array<i64: 2, 4, 1>, scalar_prefetch = 0 : i64, scratch_operands = 0 : i64, tpu.core_type = #tpu.core_type<tc>, window_params = [{transform_indices = @transform_0, window_bounds = array<i64: 1, 1, 8, 8>}, {transform_indices = @transform_1, window_bounds = array<i64: 1, 1, 8, 8>}, {transform_indices = @transform_2, window_bounds = array<i64: 1, 1, 8, 8>}, {transform_indices = @transform_3, window_bounds = array<i64: 1, 1, 8, 8>}, {transform_indices = @transform_4, window_bounds = array<i64: 1, 1, 8, 8>}, {transform_indices = @transform_5, window_bounds = array<i64: 1, 1, 8, 8>}]} {
    %c0 = arith.constant 0 : index
    %c0_0 = arith.constant 0 : index
    %c0_1 = arith.constant 0 : index
    %c0_2 = arith.constant 0 : index
    %0 = vector.load %arg3[%c0, %c0_0, %c0_1, %c0_2] : memref<1x1x8x8xf32, #tpu.memory_space<vmem>>, vector<1x1x8x8xf32>
    %1 = vector.shape_cast %0 : vector<1x1x8x8xf32> to vector<8x8xf32>
    %c0_3 = arith.constant 0 : index
    %c0_4 = arith.constant 0 : index
    %c0_5 = arith.constant 0 : index
    %c0_6 = arith.constant 0 : index
    %2 = vector.load %arg4[%c0_3, %c0_4, %c0_5, %c0_6] : memref<1x1x8x8xf32, #tpu.memory_space<vmem>>, vector<1x1x8x8xf32>
    %3 = vector.shape_cast %2 : vector<1x1x8x8xf32> to vector<8x8xf32>
    %c0_7 = arith.constant 0 : index
    %c0_8 = arith.constant 0 : index
    %c0_9 = arith.constant 0 : index
    %c0_10 = arith.constant 0 : index
    %4 = vector.load %arg5[%c0_7, %c0_8, %c0_9, %c0_10] : memref<1x1x8x8xf32, #tpu.memory_space<vmem>>, vector<1x1x8x8xf32>
    %5 = vector.shape_cast %4 : vector<1x1x8x8xf32> to vector<8x8xf32>
    %cst = arith.constant dense<0.000000e+00> : vector<8x8xf32>
    %6 = tpu.matmul %1, %3, %cst {dimension_numbers = #tpu.dot_dimension_numbers<[1], [1], [0], [0], [0, 0, 1, 0], [], []>} : vector<8x8xf32>, vector<8x8xf32>, vector<8x8xf32> -> vector<8x8xf32>
    %cst_11 = arith.constant 0.353553385 : f32
    %7 = vector.broadcast %cst_11 : f32 to vector<8x8xf32>
    %8 = arith.mulf %6, %7 : vector<8x8xf32>
    %c0_12 = arith.constant 0 : index
    %c0_13 = arith.constant 0 : index
    %c0_14 = arith.constant 0 : index
    %c0_15 = arith.constant 0 : index
    %9 = vector.load %arg6[%c0_12, %c0_13, %c0_14, %c0_15] : memref<1x1x8x8xi8, #tpu.memory_space<vmem>>, vector<1x1x8x8xi8>
    %10 = vector.shape_cast %9 : vector<1x1x8x8xi8> to vector<8x8xi8>
    %11 = arith.extsi %10 : vector<8x8xi8> to vector<8x8xi32>
    %c0_i32 = arith.constant 0 : i32
    %12 = vector.broadcast %c0_i32 : i32 to vector<8x8xi32>
    %13 = arith.cmpi eq, %11, %12 : vector<8x8xi32>
    %cst_16 = arith.constant -1.000000e+04 : f32
    %14 = vector.broadcast %cst_16 : f32 to vector<8x8xf32>
    %15 = arith.select %13, %14, %8 : vector<8x8xi1>, vector<8x8xf32>
    %cst_17 = arith.constant dense<0xFF800000> : vector<8xf32>
    %16 = vector.multi_reduction <maximumf>, %15, %cst_17 [1] : vector<8x8xf32> to vector<8xf32>
    %17 = vector.shape_cast %16 : vector<8xf32> to vector<8x1xf32>
    %18 = vector.broadcast %17 : vector<8x1xf32> to vector<8x8xf32>
    %19 = arith.subf %15, %18 : vector<8x8xf32>
    %20 = math.exp %19 : vector<8x8xf32>
    %cst_18 = arith.constant dense<0.000000e+00> : vector<8xf32>
    %21 = vector.multi_reduction <add>, %20, %cst_18 [1] : vector<8x8xf32> to vector<8xf32>
    %22 = vector.shape_cast %21 : vector<8xf32> to vector<8x1xf32>
    %23 = vector.broadcast %22 : vector<8x1xf32> to vector<8x8xf32>
    %24 = arith.divf %20, %23 : vector<8x8xf32>
    %c0_19 = arith.constant 0 : index
    %c0_20 = arith.constant 0 : index
    %c0_21 = arith.constant 0 : index
    %c0_22 = arith.constant 0 : index
    %25 = vector.load %arg8[%c0_19, %c0_20, %c0_21, %c0_22] : memref<1x1x8x8xf32, #tpu.memory_space<vmem>>, vector<1x1x8x8xf32>
    %26 = vector.shape_cast %25 : vector<1x1x8x8xf32> to vector<8x8xf32>
    %27 = vector.shape_cast %24 : vector<8x8xf32> to vector<1x1x8x8xf32>
    tpu.vector_store %arg8[%c0_19, %c0_20, %c0_21, %c0_22], %27 {strides = array<i32>} : memref<1x1x8x8xf32, #tpu.memory_space<vmem>>, vector<1x1x8x8xf32>,
    %cst_23 = arith.constant dense<0.000000e+00> : vector<8x8xf32>
    %28 = tpu.matmul %24, %5, %cst_23 {dimension_numbers = #tpu.dot_dimension_numbers<[1], [0], [0], [1], [0, 0, 1, 1], [], []>} : vector<8x8xf32>, vector<8x8xf32>, vector<8x8xf32> -> vector<8x8xf32>
    %c0_24 = arith.constant 0 : index
    %c0_25 = arith.constant 0 : index
    %c0_26 = arith.constant 0 : index
    %c0_27 = arith.constant 0 : index
    %29 = vector.load %arg7[%c0_24, %c0_25, %c0_26, %c0_27] : memref<1x1x8x8xf32, #tpu.memory_space<vmem>>, vector<1x1x8x8xf32>
    %30 = vector.shape_cast %29 : vector<1x1x8x8xf32> to vector<8x8xf32>
    %31 = vector.shape_cast %28 : vector<8x8xf32> to vector<1x1x8x8xf32>
    tpu.vector_store %arg7[%c0_24, %c0_25, %c0_26, %c0_27], %31 {strides = array<i32>} : memref<1x1x8x8xf32, #tpu.memory_space<vmem>>, vector<1x1x8x8xf32>,
    return
  }
  func.func @transform_0(%arg0: i32, %arg1: i32, %arg2: i32) -> (i32, i32, i32, i32) {
    %c0_i32 = arith.constant 0 : i32
    %c0_i32_0 = arith.constant 0 : i32
    return %arg0, %arg1, %arg2, %c0_i32 : i32, i32, i32, i32
  }
  func.func @transform_1(%arg0: i32, %arg1: i32, %arg2: i32) -> (i32, i32, i32, i32) {
    %c0_i32 = arith.constant 0 : i32
    %c0_i32_0 = arith.constant 0 : i32
    %c0_i32_1 = arith.constant 0 : i32
    return %arg0, %arg1, %c0_i32, %c0_i32_0 : i32, i32, i32, i32
  }
  func.func @transform_2(%arg0: i32, %arg1: i32, %arg2: i32) -> (i32, i32, i32, i32) {
    %c0_i32 = arith.constant 0 : i32
    %c0_i32_0 = arith.constant 0 : i32
    %c0_i32_1 = arith.constant 0 : i32
    return %arg0, %arg1, %c0_i32, %c0_i32_0 : i32, i32, i32, i32
  }
  func.func @transform_3(%arg0: i32, %arg1: i32, %arg2: i32) -> (i32, i32, i32, i32) {
    %c0_i32 = arith.constant 0 : i32
    %c0_i32_0 = arith.constant 0 : i32
    %c0_i32_1 = arith.constant 0 : i32
    return %arg0, %c0_i32, %arg2, %c0_i32_0 : i32, i32, i32, i32
  }
  func.func @transform_4(%arg0: i32, %arg1: i32, %arg2: i32) -> (i32, i32, i32, i32) {
    %c0_i32 = arith.constant 0 : i32
    %c0_i32_0 = arith.constant 0 : i32
    return %arg0, %arg1, %arg2, %c0_i32 : i32, i32, i32, i32
  }
  func.func @transform_5(%arg0: i32, %arg1: i32, %arg2: i32) -> (i32, i32, i32, i32) {
    %c0_i32 = arith.constant 0 : i32
    %c0_i32_0 = arith.constant 0 : i32
    return %arg0, %arg1, %arg2, %c0_i32 : i32, i32, i32, i32
  }
}

</mosaic_0001>

<bundles_post_ra>
// kernel: tpu_custom_call.1
= control target key start
LH: loop header
LB: loop body
LE: loop exit
PB: predicated region body
PF: predicated region fallthrough
CT: control target
= control target key end

     0   :  { %s1524_s0 = inlined_call_operand.hbm [shape: f32[2,4,8,8], index: 0, kind: input, shape index: {}]   ;;  %s1525_s1 = inlined_call_operand.hbm [shape: f32[2,4,8,8], index: 1, kind: input, shape index: {}]   ;;  %s1526_s2 = inlined_call_operand.hbm [shape: f32[2,4,8,8], index: 2, kind: input, shape index: {}]   ;;  %s1527_s3 = inlined_call_operand.vmem [shape: s8[2,1,8,8], index: 3, kind: input, shape index: {}]   ;;  %s1528_s4 = inlined_call_operand.hbm [shape: f32[2,4,8,8], index: 4, kind: output, shape index: {0}]   ;;  %s1529_s5 = inlined_call_operand.hbm [shape: f32[2,4,8,8], index: 5, kind: output, shape index: {1}]  }
   0x1   :  { %1542 = sst [smem:[#allocation23_spill]] %s1525_s1 }
   0x2   :  { %11 = vsyncpa [#allocation3], 0 }
   0x3   :  { %13 = vsyncpa [#allocation3 + $0x1], 0 }
   0x4   :  { %14 = vsyncpa [#allocation6], 0 }
   0x5   :  { %16 = vsyncpa [#allocation6 + $0x1], 0 }
   0x6   :  { %17 = vsyncpa [#allocation4], 0 }
   0x7   :  { %19 = vsyncpa [#allocation4 + $0x1], 0 }
   0x8   :  { %20 = vsyncpa [#allocation10], 0 }
   0x9   :  { %22 = vsyncpa [#allocation10 + $0x1], 0  ;;  %s1195_s18 = smov 0   ;;  %s1197_s19 = smov 0  }
   0xa   :  { %s1199_s20 = smov 0   ;;  %s1201_s21 = smov 0  }
   0xb   :  { %s1203_s22 = smov 0   ;;  %s1205_s23 = smov 0  }
   0xc   :  { %s1207_s24 = smov 0   ;;  %s1209_s25 = smov 0  }
   0xd LB: > { %1543 = sst [smem:[#allocation15_spill]] %s1128_s18  ;;  %s1236_s26 = sadd.s32 4294967295, %s1156_s25   ;;  %s1156_s25 = sphi %s1209_s25, %s28_s25   ;;  %s1152_s24 = sphi %s1207_s24, %s1574_s24   ;;  %s1148_s23 = sphi %s1205_s23, %s1573_s23   ;;  %s1144_s22 = sphi %s1203_s22, %s1572_s22   ;;  %s1140_s21 = sphi %s1201_s21, %s1571_s21   ;;  %s1136_s20 = sphi %s1199_s20, %s1577_s20   ;;  %s1132_s19 = sphi %s1197_s19, %s1576_s19   ;;  %s1128_s18 = sphi %s1195_s18, %s1575_s18  }
   0xe   : > { %1544 = sst [smem:[#allocation16_spill]] %s1148_s23  ;;  %s789_s27 = sadd.s32 4294967294, %s1156_s25  }
   0xf   : > { %1545 = sst [smem:[#allocation17_spill]] %s1152_s24  ;;  %s43_s28 = sadd.s32 1, %s1148_s23 }
  0x10   : > { %1546 = sst [smem:[#allocation18_spill]] %s1156_s25  ;;  %s47_s29 = sadd.s32 1, %s1152_s24 }
  0x11   : > { %p45_p0 = scmp.ge.s32.totalorder %s43_s28, 4  ;;  %s58_s30 = sadd.s32 1, %s1136_s20 }
  0x12   : > { %p65_p1 = scmp.ne.s32.totalorder %s1136_s20, %s1132_s19  ;;  %p66_p2 = scmp.eq.s32.totalorder %s1156_s25, 0 }
  0x13   : > { %s1579_s28 = smov (%p45_p0, %s43_s28), 0  ;;  %s1581_s29 = smov (!%p45_p0, %s47_s29), %s1152_s24 }
  0x14   : > { %1547 = sst [smem:[#allocation19_spill]] %s1579_s28  ;;  %s52_s6 = ssub.s32 %s1148_s23, %s1579_s28 }
  0x15   : > { %p1250_p3 = por %p66_p2, %p65_p1  ;;  %p49_p4 = scmp.ge.s32.totalorder %s1581_s29, 2 }
  0x16   : > { %p71_p5 = scmp.ne.s32.totalorder %s1132_s19, %s1128_s18  ;;  %p72_p6 = scmp.eq.s32.totalorder %s1236_s26, 0 }
  0x17   : > { %p183_p7 = scmp.eq.s32.totalorder %s1236_s26, 7  ;;  %s1583_s29 = smov (%p49_p4, %s1581_s29), 0 }
  0x18   : > { %1549 = sst [smem:[#allocation20_spill]] %s1583_s29  ;;  %p1260_p8 = por %p72_p6, %p71_p5 }
  0x19   : > { %p1264_p9 = por %p183_p7, %p65_p1  ;;  %s51_s10 = ssub.s32 %s1152_s24, %s1583_s29 }
  0x1a   : > { %s1550_s8 = scalar_select %p1260_p8, 1, 0 }
  0x1b   : > { %s1551_s9 = scalar_select %p1264_p9, 1, 0 }
  0x1c   : > { %p189_p10 = scmp.eq.s32.totalorder %s789_s27, 7  ;;  %s53_s11 = sor.u32 %s52_s6, %s51_s10 }
  0x1d   : > { %p56_p11 = scmp.eq.s32.totalorder %s53_s11, 0  ;;  %p860_p13 = scmp.lt.s32.totalorder %s1156_s25, 8 }
  0x1e   : > { %p1270_p12 = por %p189_p10, %p71_p5  ;;  %s1531_s13 = sand.u32 1, %s1136_s20  }
  0x1f   : > { %s1277_s14 = scalar_select %p56_p11, %s1136_s20, %s58_s30  }
  0x20   : > { %s1552_s12 = scalar_select %p1270_p12, 1, 0 }
  0x21   : > { %1554 = sst [smem:[#allocation22_spill]] %s1277_s14  ;;  %s1281_s15 = sshll.u32 %s1531_s13, 3 }
  0x22   : > { %1553 = sst [smem:[#allocation21_spill]] %s1552_s12  ;;  %s793_s16 = sshll.u32 %s1152_s24, 2 }
  0x23   : > { %s249_s17 = sadd.s32 %s1148_s23, %s793_s16  ;;  %p1287_p0 = pnand %p860_p13, %p1250_p3 }
  0x24   : > { %s1291_s6 = sshll.u32 %s249_s17, 7  ;;  %s260_s10 = sand.u32 1, %s1156_s25  }
  0x25   : > { %s1555_s27 = scalar_select %p1287_p0, 1, 0 }
  0x26   : > { %s1556_s1 = sld [smem:[#allocation23_spill]]  ;;  %s264_s16 = scalar_lea.vmem [#allocation5], %s1281_s15 }
  0x27   : > { %s273_s7 = sshll.u32 %s264_s16, 4  ;;  %s1305_s13 = scalar_lea.sflag [#allocation6], %s260_s10  ;;  %s1302_s7 = int_to_ptr.vmem [resolvable:$true] %s273_s7 }
  0x28   : > { %p1311_p4 = pneg %p1287_p0 }
  0x2c   : > { %s1298_s30 = scalar_lea.hbm %s1556_s1, %s1291_s6  ;;  %s937_s16 = scalar_lea.hbm %s1556_s1, 1024 }
  0x2d   : > { %s932_s17 = scalar_lea.hbm %s1298_s30, 128  ;;  %p938_p7 = scmp.lt.u32.totalorder %s1298_s30, %s1556_s1 }
  0x2e   : > { %p933_p3 = scmp.ne.s32.totalorder %s1298_s30, %s932_s17  ;;  %p939_p10 = scmp.lt.u32.totalorder %s937_s16, %s932_s17 }
  0x2f   : > { %p941_p13 = scmp.lt.u32.totalorder %s932_s17, %s1298_s30 }
  0x30   : > { %p935_p5 = pnand %p1311_p4, %p933_p3  ;;  %p940_p11 = por %p939_p10, %p938_p7 }
  0x32   : > { %p936_p6 = pneg %p935_p5  ;;  %p942_p1 = por %p941_p13, %p940_p11 }
  0x34   : > { %p943_p2 = pnand %p942_p1, %p936_p6 }
  0x36   : > { %946 = shalt.err (!%p943_p2)
}
  0x37   : > { %s947_s10 = scalar_lea.vmem %s1302_s7, 128  ;;  %s1158_s29 = smov [#allocation5]  }
  0x38   : > { %p948_p3 = scmp.ne.s32.totalorder %s1302_s7, %s947_s10  ;;  %s952_s11 = sshll.u32 %s1158_s29, 4  ;;  %s953_s11 = int_to_ptr.vmem [resolvable:$false] %s952_s11 }
  0x39   : > { %s954_s23 = scalar_lea.vmem %s953_s11, 256  ;;  %p955_p9 = scmp.lt.s32.totalorder %s1302_s7, %s953_s11 }
  0x3a   : > { %p950_p5 = pnand %p948_p3, %p1311_p4  ;;  %p956_p8 = scmp.lt.s32.totalorder %s954_s23, %s947_s10 }
  0x3c   : > { %p951_p12 = pneg %p950_p5  ;;  %p957_p7 = por %p956_p8, %p955_p9 }
  0x3e   : > { %p958_p10 = pnand %p957_p7, %p951_p12 }
  0x40   : > { %961 = shalt.err (!%p958_p10)
}
  0x41   : > { %849 = dma.hbm_to_vmem [thread:$0]  (!%p1287_p0), %s1298_s30, 128, %s1302_s7, %s1305_s13  }
  0x42   : > { %p1558_p1 = scmp.lt.s32.totalorder %s1156_s25, 9  ;;  %p1559_p2 = scmp.ge.s32.totalorder %s1156_s25, 1 }
  0x43   : > { %s1347_s10 = scalar_lea.hbm %s1524_s0, %s1291_s6  ;;  %s243_s29 = scalar_lea.vmem [#allocation2], %s1281_s15 }
  0x44   : > { %p1339_p6 = pnand %p1559_p2, %p1558_p1  ;;  %s253_s11 = sshll.u32 %s243_s29, 4  ;;  %s1350_s11 = int_to_ptr.vmem [resolvable:$true] %s253_s11 }
  0x45   : > { %s1356_s23 = scalar_lea.hbm %s1526_s2, %s1291_s6  ;;  %s1561_s1 = sand.u32 1, %s1136_s20  }
  0x46   : > { %s1560_s24 = scalar_select %p1339_p6, 1, 0 }
  0x47   : > { %s240_s14 = scalar_lea.sflag [#allocation3], %s1561_s1  ;;  %s962_s12 = scalar_lea.hbm %s1347_s10, 128 }
  0x48   : > { %p963_p8 = scmp.ne.s32.totalorder %s1347_s10, %s962_s12  ;;  %s967_s18 = scalar_lea.hbm %s1524_s0, 1024 }
  0x49   : > { %p968_p11 = scmp.lt.u32.totalorder %s1347_s10, %s1524_s0  ;;  %p969_p13 = scmp.lt.u32.totalorder %s967_s18, %s962_s12 }
  0x4a   : > { %p965_p9 = pnand %p963_p8, %p1311_p4  ;;  %p971_p5 = scmp.lt.u32.totalorder %s962_s12, %s1347_s10 }
  0x4b   : > { %p970_p3 = por %p969_p13, %p968_p11 }
  0x4c   : > { %p966_p12 = pneg %p965_p9 }
  0x4d   : > { %p972_p7 = por %p971_p5, %p970_p3 }
  0x4f   : > { %p973_p10 = pnand %p972_p7, %p966_p12 }
  0x51   : > { %976 = shalt.err (!%p973_p10)
}
  0x52   : > { %s977_s1 = scalar_lea.vmem %s1350_s11, 128  ;;  %s1159_s6 = smov [#allocation2]  }
  0x53   : > { %p978_p1 = scmp.ne.s32.totalorder %s1350_s11, %s977_s1  ;;  %s982_s30 = sshll.u32 %s1159_s6, 4  ;;  %s983_s30 = int_to_ptr.vmem [resolvable:$false] %s982_s30 }
  0x54   : > { %s984_s25 = scalar_lea.vmem %s983_s30, 256  ;;  %p985_p9 = scmp.lt.s32.totalorder %s1350_s11, %s983_s30 }
  0x55   : > { %p980_p2 = pnand %p978_p1, %p1311_p4  ;;  %p986_p6 = scmp.lt.s32.totalorder %s984_s25, %s977_s1 }
  0x57   : > { %p981_p8 = pneg %p980_p2  ;;  %p987_p11 = por %p986_p6, %p985_p9 }
  0x59   : > { %p988_p13 = pnand %p987_p11, %p981_p8 }
  0x5b   : > { %991 = shalt.err (!%p988_p13)
}
  0x5c   : > { %846 = dma.hbm_to_vmem [thread:$0]  (!%p1287_p0), %s1347_s10, 128, %s1350_s11, %s240_s14  }
  0x5d   : > { %s284_s18 = scalar_lea.vmem [#allocation7], %s1281_s15  ;;  %s992_s7 = scalar_lea.hbm %s1356_s23, 128 }
  0x5e   : > { %s293_s12 = sshll.u32 %s284_s18, 4  ;;  %p993_p12 = scmp.ne.s32.totalorder %s1356_s23, %s992_s7  ;;  %s294_s12 = int_to_ptr.vmem [resolvable:$true] %s293_s12 }
  0x5f   : > { %s997_s29 = scalar_lea.hbm %s1526_s2, 1024  ;;  %p998_p5 = scmp.lt.u32.totalorder %s1356_s23, %s1526_s2 }
  0x60   : > { %p995_p6 = pnand %p993_p12, %p1311_p4  ;;  %p999_p7 = scmp.lt.u32.totalorder %s997_s29, %s992_s7 }
  0x61   : > { %p1001_p1 = scmp.lt.u32.totalorder %s992_s7, %s1356_s23 }
  0x62   : > { %p996_p3 = pneg %p995_p6  ;;  %p1000_p10 = por %p999_p7, %p998_p5 }
  0x64   : > { %p1002_p2 = por %p1001_p1, %p1000_p10 }
  0x66   : > { %p1003_p8 = pnand %p1002_p2, %p996_p3 }
  0x68   : > { %1006 = shalt.err (!%p1003_p8)
}
  0x69   : > { %s1007_s14 = scalar_lea.vmem %s294_s12, 128  ;;  %s1160_s15 = smov [#allocation7]  }
  0x6a   : > { %p1008_p9 = scmp.ne.s32.totalorder %s294_s12, %s1007_s14  ;;  %s1012_s10 = sshll.u32 %s1160_s15, 4  ;;  %s1013_s10 = int_to_ptr.vmem [resolvable:$false] %s1012_s10 }
  0x6b   : > { %s1014_s11 = scalar_lea.vmem %s1013_s10, 256  ;;  %p1015_p12 = scmp.lt.s32.totalorder %s294_s12, %s1013_s10 }
  0x6c   : > { %p1010_p11 = pnand %p1008_p9, %p1311_p4  ;;  %p1016_p6 = scmp.lt.s32.totalorder %s1014_s11, %s1007_s14 }
  0x6e   : > { %p1011_p13 = pneg %p1010_p11  ;;  %p1017_p0 = por %p1016_p6, %p1015_p12 }
  0x70   : > { %p1018_p5 = pnand %p1017_p0, %p1011_p13 }
  0x72   : > { %1021 = shalt.err (!%p1018_p5)
}
  0x73   : > { %p1562_p7 = scmp.ne.s32.totalorder %s1555_s27, 0  ;;  %p1563_p3 = scmp.ne.s32.totalorder %s1560_s24, 0 }
  0x74   : > { %s1403_s28 = sand.u32 (!%p1563_p3), 1, %s1132_s19   ;;  %p1564_p0 = scmp.ne.s32.totalorder (!%p1563_p3), %s1550_s8, 0 }
  0x75   : > { %852 = dma.hbm_to_vmem [thread:$0]  (!%p1562_p7), %s1356_s23, 128, %s294_s12, %s1305_s13  }
  0x76   : > { %312 = sbr.rel (%p1563_p3) target bundleno = 890 (0x37a), region = 36  ;;  %s1406_s30 = sshll.u32 (!%p1563_p3), %s1403_s28, 3 }
  0x77   : > { %s315_s25 = scalar_lea.sflag (!%p1563_p3), [#allocation3], %s1403_s28  ;;  %s318_s18 = scalar_lea.vmem (!%p1563_p3), [#allocation2], %s1406_s30 }
  0x7d   : > { %1111 = dma.done.wait (%p1564_p0), %s315_s25, 128  }
  0x7e   : > { %1113 = vsyncadd (%p1564_p0), %s315_s25, 4294967168  ;;  %s323_s13 = sand.u32 1, %s1236_s26   ;;  %s327_s24 = scalar_lea.vmem [#allocation5], %s1406_s30 }
  0x7f   : > { %s324_s27 = scalar_lea.sflag [#allocation6], %s323_s13 }
  0x80   : > { %1115 = dma.done.wait (%p1564_p0), %s324_s27, 256  }
  0x81   : > { %1117 = vsyncadd (%p1564_p0), %s324_s27, 4294967040  ;;  %v1161_v0 = vmov 0.0   ;;  %vm1162_vm0 = vmmov 0   ;;  %vm395_vm1 = vcmask 64512   ;;  %v393_v1 = vld [vmem:[%s327_s24] sm:$0xff]  ;;  %v392_v2 = vld [vmem:[%s318_s18] sm:$0xff] }
  0x82   : > { %823 = vmatprep.subr.mxu0 %v1161_v0  ;;  %825 = vmatprep.mubr.msk.f32.mxu0 %vm1162_vm0, %v1161_v0  ;;  %p385_p4 = scmp.lt.s32.totalorder %s1144_s22, 1  ;;  %s336_s17 = scalar_lea.vmem [#allocation7], %s1406_s30 }
  0x83   : > { %828 = vmatprep.subr.mxu1 %v1161_v0  ;;  %830 = vmatprep.mubr.msk.f32.mxu1 %vm1162_vm0, %v1161_v0  ;;  %v394_v15 = vld [vmem:[%s336_s17] sm:$0xff]  ;;  %s384_s16 = scalar_lea.vmem [#allocation9], %s1406_s30  ;;  %s813_s29 = sshll.u32 %s1144_s22, 2 }
  0x84   : > { %824 = vmatpush3.xpose.msk.msra.mxu0 %vm395_vm1, %v393_v1  ;;  %s386_s26 = scalar_select %p385_p4, %s1144_s22, 1  ;;  %829 = vmatpush3.msra.mxu1 %v394_v15 }
  0x85   : > { %s1435_s1 = sadd.s32 %s1140_s21, %s813_s29  ;;  %s601_s11 = sshll.u32 %s384_s16, 4  ;;  %s602_s11 = int_to_ptr.vmem [resolvable:$true] %s601_s11 }
  0x86   : > { %s807_s23 = sshll.u32 %s386_s26, 1  ;;  %s814_s6 = sshll.u32 %s1435_s1, 7 }
  0x87   : > { %826 = vmatmul.mubr.msk.f32.vlgmr.msra.gmra.mrb[0].mxu0 %vm395_vm1, %v392_v2  ;;  %s391_s7 = scalar_lea.vmem %s1527_s3, %s807_s23  ;;  %s1443_s10 = scalar_lea.hbm %s1529_s5, %s814_s6 }
  0x88   : > { %v473_v3 = vld [vmem:[%s391_s7] sm:$0x3]  ;;  %s569_s25 = scalar_lea.sflag [#allocation10], %s1403_s28  ;;  %s1022_s18 = scalar_lea.vmem %s602_s11, 128 }
  0x89   : > { %v474_v4 = vunpack.c.0.s8 %v473_v3  ;;  %p1023_p10 = scmp.ne.s32.totalorder %s602_s11, %s1022_s18  ;;  %p1565_p1 = scmp.ne.s32.totalorder %s1551_s9, 0 }
  0x8a   : > { %s1163_s22 = smov [#allocation9]  }
  0x8b   : > { %vm475_vm2 = vcmp.eq.s32.totalorder %v474_v4, 0  ;;  %p1024_p2 = pnand %p1023_p10, %p1565_p1  ;;  %s1026_s21 = sshll.u32 %s1163_s22, 4  ;;  %s1027_s21 = int_to_ptr.vmem [resolvable:$false] %s1026_s21 }
  0x8c   : > { %s1028_s13 = scalar_lea.vmem %s1027_s21, 256  ;;  %p1029_p9 = scmp.lt.s32.totalorder %s602_s11, %s1027_s21 }
  0x8d   : > { %p1025_p8 = pneg %p1024_p2  ;;  %p1030_p11 = scmp.lt.s32.totalorder %s1028_s13, %s1022_s18 }
  0x8f   : > { %p1031_p13 = por %p1030_p11, %p1029_p9 }
  0x91   : > { %p1032_p12 = pnand %p1031_p13, %p1025_p8 }
 0x15a   : > { %v468_v5 = vpop.f32.mrb[0].mxu0 }
 0x15b   : > { %v472_v6 = vmul.f32 0.35355338, %v468_v5  ;;  %v827_v7 = vpop.f32.mrb[1].mxu0 }
 0x15d   : > { %v476_v8 = vsel %vm475_vm2, -10000.0, %v472_v6 }
 0x15e   : > { %v477_v9 = vsel %vm395_vm1, %v476_v8, -inf }
 0x15f   : > { %478 = vmax.xlane.f32.xlu0 %v477_v9 }
 0x1ec   : > { %v479_v10 = vpop.xlane.xlu0 %478 }
 0x1ed   : > { %v480_v11 = vsub.f32 %v476_v8, %v479_v10 }
 0x1ef   : > { %v481_v12 = vmul.f32 1.442695, %v480_v11 }
 0x1f1   : > { %928 = vpow2.f32 %v481_v12 }
 0x1fb   : > { %v929_v13 = vpop.eup %928 }
 0x1fc   : > { %v483_v14 = vsel %vm395_vm1, %v929_v13, 0.0 }
 0x1fd   : > { %484 = vadd.xlane.f32.xlu0 %v483_v14 }
 0x28a   : > { %v485_v16 = vpop.xlane.xlu0 %484 }
 0x28b   : > { %930 = vrcp.f32 %v485_v16 }
 0x295   : > { %v931_v17 = vpop.eup %930 }
 0x296   : > { %v487_v18 = vmul.f32 %v931_v17, %v929_v13 }
 0x298   : > { %831 = vmatmul.mubr.msk.f32.vlgmr.msra.gmra.mrb[0].mxu1 %vm395_vm1, %v487_v18  ;;  %488 = vst.msk [vmem:[%s384_s16] sm:$0xff] %vm395_vm1, %v487_v18 }
 0x299   : > { %1035 = shalt.err (!%p1032_p12)
}
 0x29a   : > { %s1036_s27 = scalar_lea.hbm %s1443_s10, 128  ;;  %s1040_s23 = scalar_lea.hbm %s1529_s5, 1024 }
 0x29b   : > { %p1037_p6 = scmp.ne.s32.totalorder %s1443_s10, %s1036_s27  ;;  %p1041_p3 = scmp.lt.u32.totalorder %s1443_s10, %s1529_s5 }
 0x29c   : > { %p1042_p0 = scmp.lt.u32.totalorder %s1040_s23, %s1036_s27  ;;  %p1044_p10 = scmp.lt.u32.totalorder %s1036_s27, %s1443_s10 }
 0x29d   : > { %p1038_p5 = pnand %p1037_p6, %p1565_p1 }
 0x29e   : > { %p1043_p4 = por %p1042_p0, %p1041_p3 }
 0x29f   : > { %p1039_p7 = pneg %p1038_p5 }
 0x2a0   : > { %p1045_p2 = por %p1044_p10, %p1043_p4 }
 0x2a2   : > { %p1046_p8 = pnand %p1045_p2, %p1039_p7 }
 0x2a4   : > { %1049 = shalt.err (!%p1046_p8)
}
 0x2a5   : > { %840 = dma.vmem_to_hbm [thread:$0]  (%p1565_p1), %s602_s11, 128, %s1443_s10, %s569_s25  }
 0x2a6   : > { %s377_s7 = scalar_lea.vmem [#allocation8], %s1406_s30  ;;  %s1469_s14 = scalar_lea.hbm %s1528_s4, %s814_s6 }
 0x2a7   : > { %s585_s17 = sshll.u32 %s377_s7, 4  ;;  %s564_s15 = scalar_lea.sflag [#allocation4], %s1403_s28  ;;  %s1471_s17 = int_to_ptr.vmem [resolvable:$true] %s585_s17 }
 0x2a8   : > { %s1050_s18 = scalar_lea.vmem %s1471_s17, 128  ;;  %s1164_s30 = smov [#allocation8]  }
 0x2a9   : > { %p1051_p9 = scmp.ne.s32.totalorder %s1471_s17, %s1050_s18  ;;  %s1054_s1 = sshll.u32 %s1164_s30, 4  ;;  %s1055_s1 = int_to_ptr.vmem [resolvable:$false] %s1054_s1 }
 0x2aa   : > { %s1056_s6 = scalar_lea.vmem %s1055_s1, 256  ;;  %p1057_p12 = scmp.lt.s32.totalorder %s1471_s17, %s1055_s1 }
 0x2ab   : > { %p1052_p11 = pnand %p1051_p9, %p1565_p1  ;;  %p1058_p6 = scmp.lt.s32.totalorder %s1056_s6, %s1050_s18 }
 0x2ad   : > { %p1053_p13 = pneg %p1052_p11  ;;  %p1059_p5 = por %p1058_p6, %p1057_p12 }
 0x2af   : > { %p1060_p7 = pnand %p1059_p5, %p1053_p13 }
 0x36b   : > { %v558_v19 = vpop.f32.mrb[0].mxu1 }
 0x36c   : > { %562 = vst.msk [vmem:[%s377_s7] sm:$0xff] %vm395_vm1, %v558_v19  ;;  %v832_v20 = vpop.f32.mrb[1].mxu1 }
 0x36d   : > { %1063 = shalt.err (!%p1060_p7)
}
 0x36e   : > { %s1064_s28 = scalar_lea.hbm %s1469_s14, 128  ;;  %s1068_s25 = scalar_lea.hbm %s1528_s4, 1024 }
 0x36f   : > { %p1065_p3 = scmp.ne.s32.totalorder %s1469_s14, %s1064_s28  ;;  %p1069_p10 = scmp.lt.u32.totalorder %s1469_s14, %s1528_s4 }
 0x370   : > { %p1070_p2 = scmp.lt.u32.totalorder %s1068_s25, %s1064_s28  ;;  %p1072_p9 = scmp.lt.u32.totalorder %s1064_s28, %s1469_s14 }
 0x371   : > { %p1066_p0 = pnand %p1065_p3, %p1565_p1 }
 0x372   : > { %p1071_p8 = por %p1070_p2, %p1069_p10 }
 0x373   : > { %p1067_p4 = pneg %p1066_p0 }
 0x374   : > { %p1073_p11 = por %p1072_p9, %p1071_p8 }
 0x376   : > { %p1074_p13 = pnand %p1073_p11, %p1067_p4 }
 0x378   : > { %1077 = shalt.err (!%p1074_p13)
}
 0x379   : > { %839 = dma.vmem_to_hbm [thread:$0]  (%p1565_p1), %s1471_s17, 128, %s1469_s14, %s564_s15  }
 0x37a PF: > { %s1566_s13 = sld [smem:[#allocation18_spill]]  ;;  %s1567_s27 = sld [smem:[#allocation15_spill]] }
 0x37b   : > { %s1568_s24 = sld [smem:[#allocation21_spill]] }
 0x380   : > { %p861_p12 = scmp.ge.s32.totalorder %s1566_s13, 2  ;;  %s613_s26 = sand.u32 1, %s1567_s27  }
 0x381   : > { %p1569_p6 = scmp.ne.s32.totalorder %s1568_s24, 0  ;;  %s614_s23 = scalar_lea.sflag [#allocation4], %s613_s26 }
 0x383   : > { %p854_p5 = pnand %p861_p12, %p1569_p6 }
 0x385   : > { %1119 = dma.done.wait (!%p854_p5), %s614_s23, 128  }
 0x386   : > { %1121 = vsyncadd (!%p854_p5), %s614_s23, 4294967168  ;;  %s623_s8 = scalar_lea.sflag [#allocation10], %s613_s26 }
 0x387   : > { %1123 = dma.done.wait (!%p854_p5), %s623_s8, 128  }
 0x388   : > { %1125 = vsyncadd (!%p854_p5), %s623_s8, 4294967168  ;;  %s28_s25 = sadd.s32 1, %s1566_s13   ;;  %s1570_s9 = sld [smem:[#allocation22_spill]] }
 0x389   : > { %p25_p7 = scmp.ge.s32.totalorder %s28_s25, 10   ;;  %s1571_s21 = sld [smem:[#allocation16_spill]] }
 0x38a   : > { %s1572_s22 = sld [smem:[#allocation17_spill]]  ;;  %s1573_s23 = sld [smem:[#allocation19_spill]] }
 0x38b   : > { %s1574_s24 = sld [smem:[#allocation20_spill]]  ;;  %s1575_s18 = smov %s1132_s19 }
 0x38c   : > { %s1576_s19 = smov %s1136_s20  ;;  %27 = sbr.rel (!%p25_p7) target bundleno = 13 (0xd), region = 125 }
 0x38e   : > { %s1577_s20 = smov %s1570_s9 }
 0x393   :  { %628 = vsyncpa [#allocation3], 1 }
 0x394   :  { %630 = vsyncpa [#allocation3 + $0x1], 1 }
 0x395   :  { %631 = vsyncpa [#allocation6], 1 }
 0x396   :  { %633 = vsyncpa [#allocation6 + $0x1], 1 }
 0x397   :  { %634 = vsyncpa [#allocation4], 1 }
 0x398   :  { %636 = vsyncpa [#allocation4 + $0x1], 1 }
 0x399   :  { %637 = vsyncpa [#allocation10], 1 }
 0x39a   :  { %639 = vsyncpa [#allocation10 + $0x1], 1 }

</bundles_post_ra>
